<compile_context>
chip_gen: v5e
topology: v5e:2x2
jax: 0.10.0
libtpu: 0.0.40
codegen_flags: <defaults>
</compile_context>

<pallas_src>
import functools

import numpy as np
import jax
import jax.numpy as jnp
from jax.experimental import pallas as pl
from jax.experimental.pallas import tpu as pltpu


# ---------------------------------------------------------------------------
# Fused kernel: pool feat0..2 to feat3's (h, w), SE gate, scale, piecewise
# store.  One grid step per batch block.
# ---------------------------------------------------------------------------
def _se_fused_kernel(f0_ref, f1_ref, f2_ref, f3_ref,
                     p0_ref, p1_ref, p2_ref,
                     w1_ref, w2_ref, o_ref):
    s_spatial = o_ref.shape[-1]
    inv_s = 1.0 / s_spatial

    def pooled_level(f_ref, p_ref):
        # (Bblk, Ci, Qi) @ (Qi, S) -> (Bblk, Ci, S) on the MXU with
        # M = Bblk*Ci and f32 accumulation.  Leading-dim merge/split
        # reshapes keep the lane dim (Qi / S) untouched.
        bb, ci, qi = f_ref.shape
        lhs = f_ref[...].reshape(bb * ci, qi)
        out = jnp.dot(lhs, p_ref[...], preferred_element_type=jnp.float32)
        return out.reshape(bb, ci, s_spatial)

    levels = (
        pooled_level(f0_ref, p0_ref),
        pooled_level(f1_ref, p1_ref),
        pooled_level(f2_ref, p2_ref),
        f3_ref[...].astype(jnp.float32),          # already at target (h, w)
    )

    # Squeeze: per-channel spatial means feed fc1 as per-level partial MXU
    # dots, so the full (Bblk, C) squeeze vector is never built by a concat.
    z_pre = None
    off = 0
    for lvl in levels:
        ci = lvl.shape[1]
        y_i = jnp.sum(lvl, axis=2) * inv_s                        # (Bblk, Ci)
        part = jnp.dot(y_i, w1_ref[off:off + ci, :],
                       preferred_element_type=jnp.float32)        # (Bblk, hid)
        z_pre = part if z_pre is None else z_pre + part
        off += ci

    z = jnp.maximum(z_pre, 0.0)                                   # (Bblk, hid)
    gate = jax.nn.sigmoid(                                        # (Bblk, C)
        jnp.dot(z, w2_ref[...], preferred_element_type=jnp.float32))

    # Excite + scale: piecewise stores into the output channel slices, same
    # order as the reference torch.cat((p0, p1, p2, feat3), dim=1).
    off = 0
    for lvl in levels:
        ci = lvl.shape[1]
        g_i = gate[:, off:off + ci]                               # (Bblk, Ci)
        o_ref[:, off:off + ci, :] = (lvl * g_i[:, :, None]).astype(o_ref.dtype)
        off += ci
    # TODO(synk): for small h*w these stores are lane-masked (S < 128); a
    # fully lane-dense (Bblk, C*S) output block would additionally need an
    # in-kernel sublane->lane reshape of each scaled tile.


# ---------------------------------------------------------------------------
# Host-side helpers
# ---------------------------------------------------------------------------
@functools.lru_cache(maxsize=None)
def _pool_matrix_T(Hi, Wi, h, w):
    """(Hi*Wi, h*w) matrix P^T so that x_flat @ P^T == AdaptiveAvgPool2d((h, w))."""
    P = np.zeros((h * w, Hi * Wi), dtype=np.float32)
    for oh in range(h):
        hs = (oh * Hi) // h
        he = -(-((oh + 1) * Hi) // h)       # ceil
        for ow in range(w):
            ws = (ow * Wi) // w
            we = -(-((ow + 1) * Wi) // w)   # ceil
            wt = 1.0 / ((he - hs) * (we - ws))
            for ih in range(hs, he):
                for iw in range(ws, we):
                    P[oh * w + ow, ih * Wi + iw] = wt
    return P.T


def _pick_batch_block(B, per_batch_bytes, resident_bytes, vmem_budget_bytes):
    """Largest divisor of B whose double-buffered streams fit the VMEM budget."""
    usable = max(vmem_budget_bytes - 2 * resident_bytes, 2 * per_batch_bytes)
    cap = max(1, usable // (2 * per_batch_bytes))     # x2: double buffering
    if B >= 2:
        # Keep >= 2 grid steps so the "parallel" batch axis can shard across
        # the two TensorCores on v7x (measured no-op on single-TC v5e/v6e).
        cap = min(cap, B // 2)
    cap = int(min(cap, B))
    bblk = 1
    for d in range(1, cap + 1):
        if B % d == 0:
            bblk = d
    return bblk


def se_layer(feats, w1, w2, *, stream_dtype=jnp.float32,
             out_dtype=jnp.float32, vmem_budget_bytes=40 * 2**20):
    """feats: list of 4 NCHW arrays (feat3 smallest); w1: (C, C//r); w2: (C//r, C)."""
    feat0, feat1, feat2, feat3 = feats
    B, c3, h, w = feat3.shape
    S = h * w

    flats, pmats, chans = [], [], []
    for f in (feat0, feat1, feat2):
        _, Ci, Hi, Wi = f.shape
        flats.append(f.reshape(B, Ci, Hi * Wi).astype(stream_dtype))  # free reshape
        pmats.append(jnp.asarray(_pool_matrix_T(Hi, Wi, h, w), dtype=stream_dtype))
        chans.append(Ci)
    f3_flat = feat3.reshape(B, c3, S).astype(stream_dtype)
    C = sum(chans) + c3
    hid = w1.shape[1]
    w1 = w1.astype(jnp.float32)          # tiny; keep the gate math in f32
    w2 = w2.astype(jnp.float32)

    # Batch block from a VMEM budget (streams are double-buffered; the
    # pooling matrices and fc weights stay resident).
    sbytes = jnp.dtype(stream_dtype).itemsize
    per_batch = ((sum(fl.shape[1] * fl.shape[2] for fl in flats) + c3 * S) * sbytes
                 + C * S * jnp.dtype(out_dtype).itemsize)
    resident = sum(int(p.size) for p in pmats) * sbytes + (w1.size + w2.size) * 4
    Bblk = _pick_batch_block(B, per_batch, resident, vmem_budget_bytes)
    grid = (B // Bblk,)

    c0, c1, c2 = chans
    q0, q1, q2 = (fl.shape[2] for fl in flats)

    in_specs = [
        pl.BlockSpec((Bblk, c0, q0), lambda b: (b, 0, 0)),
        pl.BlockSpec((Bblk, c1, q1), lambda b: (b, 0, 0)),
        pl.BlockSpec((Bblk, c2, q2), lambda b: (b, 0, 0)),
        pl.BlockSpec((Bblk, c3, S), lambda b: (b, 0, 0)),
        pl.BlockSpec(pmats[0].shape, lambda b: (0, 0)),   # VMEM-resident
        pl.BlockSpec(pmats[1].shape, lambda b: (0, 0)),
        pl.BlockSpec(pmats[2].shape, lambda b: (0, 0)),
        pl.BlockSpec((C, hid), lambda b: (0, 0)),
        pl.BlockSpec((hid, C), lambda b: (0, 0)),
    ]

    out_flat = pl.pallas_call(
        _se_fused_kernel,
        out_shape=jax.ShapeDtypeStruct((B, C, S), out_dtype),
        grid=grid,
        in_specs=in_specs,
        out_specs=pl.BlockSpec((Bblk, C, S), lambda b: (b, 0, 0)),
        compiler_params=pltpu.CompilerParams(
            dimension_semantics=("parallel",),
            vmem_limit_bytes=48 * 2**20),
    )(flats[0], flats[1], flats[2], f3_flat,
      pmats[0], pmats[1], pmats[2], w1, w2)

    return out_flat.reshape(B, C, h, w)


# ---------------------------------------------------------------------------
# Pure-JAX reference (mirrors the PyTorch forward, divisible-pooling case)
# ---------------------------------------------------------------------------
def se_layer_ref(feats, w1, w2):
    feat0, feat1, feat2, feat3 = feats
    _, _, h, w = feat3.shape

    def pool(x):
        B, Ci, Hi, Wi = x.shape
        return x.reshape(B, Ci, h, Hi // h, w, Wi // w).mean(axis=(3, 5))

    feat = jnp.concatenate([pool(feat0), pool(feat1), pool(feat2), feat3], axis=1)
    y = feat.mean(axis=(2, 3))
    z = jnp.maximum(y @ w1, 0.0)
    s = jax.nn.sigmoid(z @ w2)
    return feat * s[:, :, None, None]


if __name__ == "__main__":
    key = jax.random.PRNGKey(0)
    k0, k1, k2, k3, kw1, kw2 = jax.random.split(key, 6)

    B = 2
    c0 = c1 = c2 = c3 = 8
    C = c0 + c1 + c2 + c3        # 32 == `channel` of SELayer
    reduction = 16
    hid = C // reduction         # 2

    # Feature pyramid (NCHW); feat3 has the smallest spatial size (target h, w).
    feat0 = jax.random.normal(k0, (B, c0, 32, 32), jnp.float32)
    feat1 = jax.random.normal(k1, (B, c1, 16, 16), jnp.float32)
    feat2 = jax.random.normal(k2, (B, c2, 8, 8), jnp.float32)
    feat3 = jax.random.normal(k3, (B, c3, 4, 4), jnp.float32)

    # fc weights (bias=False), stored as (in, out): w1 = fc1.weight.T,
    # w2 = fc2.weight.T, so the reference computes x @ W.
    w1 = jax.random.normal(kw1, (C, hid), jnp.float32) * 0.1
    w2 = jax.random.normal(kw2, (hid, C), jnp.float32) * 0.1

    feats = [feat0, feat1, feat2, feat3]
    ref = jax.block_until_ready(se_layer_ref(feats, w1, w2))

    # f32 streaming path: matches the reference tightly.
    out_f32 = jax.block_until_ready(se_layer(feats, w1, w2))
    np.testing.assert_allclose(np.asarray(out_f32), np.asarray(ref),
                               rtol=1e-5, atol=1e-5)

    # bf16 streaming path (the bandwidth-bound fast path): looser tolerance.
    out_bf16 = jax.block_until_ready(
        se_layer(feats, w1, w2, stream_dtype=jnp.bfloat16))
    np.testing.assert_allclose(np.asarray(out_bf16), np.asarray(ref),
                               rtol=2e-2, atol=2e-2)

    print("KERNEL_OK")
</pallas_src>

<mosaic_0001>
module attributes {stable_mosaic.version = 11 : i64} {
  func.func @_se_fused_kernel(%arg0: i32, %arg1: memref<1x8x1024xf32, #tpu.memory_space<vmem>>, %arg2: memref<1x8x256xf32, #tpu.memory_space<vmem>>, %arg3: memref<1x8x64xf32, #tpu.memory_space<vmem>>, %arg4: memref<1x8x16xf32, #tpu.memory_space<vmem>>, %arg5: memref<1024x16xf32, #tpu.memory_space<vmem>>, %arg6: memref<256x16xf32, #tpu.memory_space<vmem>>, %arg7: memref<64x16xf32, #tpu.memory_space<vmem>>, %arg8: memref<32x2xf32, #tpu.memory_space<vmem>>, %arg9: memref<2x32xf32, #tpu.memory_space<vmem>>, %arg10: memref<1x32x16xf32, #tpu.memory_space<vmem>>) attributes {dimension_semantics = [#tpu.dimension_semantics<parallel>], iteration_bounds = array<i64: 2>, scalar_prefetch = 0 : i64, scratch_operands = 0 : i64, tpu.core_type = #tpu.core_type<tc>, window_params = [{transform_indices = @transform_0, window_bounds = array<i64: 1, 8, 1024>}, {transform_indices = @transform_1, window_bounds = array<i64: 1, 8, 256>}, {transform_indices = @transform_2, window_bounds = array<i64: 1, 8, 64>}, {transform_indices = @transform_3, window_bounds = array<i64: 1, 8, 16>}, {pipeline_mode = #tpu.pipeline_mode<synchronous>, transform_indices = @transform_4, window_bounds = array<i64: 1024, 16>}, {pipeline_mode = #tpu.pipeline_mode<synchronous>, transform_indices = @transform_5, window_bounds = array<i64: 256, 16>}, {pipeline_mode = #tpu.pipeline_mode<synchronous>, transform_indices = @transform_6, window_bounds = array<i64: 64, 16>}, {pipeline_mode = #tpu.pipeline_mode<synchronous>, transform_indices = @transform_7, window_bounds = array<i64: 32, 2>}, {pipeline_mode = #tpu.pipeline_mode<synchronous>, transform_indices = @transform_8, window_bounds = array<i64: 2, 32>}, {transform_indices = @transform_9, window_bounds = array<i64: 1, 32, 16>}]} {
    %c0 = arith.constant 0 : index
    %c0_0 = arith.constant 0 : index
    %c0_1 = arith.constant 0 : index
    %0 = vector.load %arg1[%c0, %c0_0, %c0_1] : memref<1x8x1024xf32, #tpu.memory_space<vmem>>, vector<1x8x1024xf32>
    %1 = vector.shape_cast %0 : vector<1x8x1024xf32> to vector<8x1024xf32>
    %c0_2 = arith.constant 0 : index
    %c0_3 = arith.constant 0 : index
    %2 = vector.load %arg5[%c0_2, %c0_3] : memref<1024x16xf32, #tpu.memory_space<vmem>>, vector<1024x16xf32>
    %cst = arith.constant dense<0.000000e+00> : vector<8x16xf32>
    %3 = tpu.matmul %1, %2, %cst {dimension_numbers = #tpu.dot_dimension_numbers<[1], [0], [0], [1], [0, 0, 1, 1], [], []>} : vector<8x1024xf32>, vector<1024x16xf32>, vector<8x16xf32> -> vector<8x16xf32>
    %4 = vector.shape_cast %3 : vector<8x16xf32> to vector<1x8x16xf32>
    %c0_4 = arith.constant 0 : index
    %c0_5 = arith.constant 0 : index
    %c0_6 = arith.constant 0 : index
    %5 = vector.load %arg2[%c0_4, %c0_5, %c0_6] : memref<1x8x256xf32, #tpu.memory_space<vmem>>, vector<1x8x256xf32>
    %6 = vector.shape_cast %5 : vector<1x8x256xf32> to vector<8x256xf32>
    %c0_7 = arith.constant 0 : index
    %c0_8 = arith.constant 0 : index
    %7 = vector.load %arg6[%c0_7, %c0_8] : memref<256x16xf32, #tpu.memory_space<vmem>>, vector<256x16xf32>
    %cst_9 = arith.constant dense<0.000000e+00> : vector<8x16xf32>
    %8 = tpu.matmul %6, %7, %cst_9 {dimension_numbers = #tpu.dot_dimension_numbers<[1], [0], [0], [1], [0, 0, 1, 1], [], []>} : vector<8x256xf32>, vector<256x16xf32>, vector<8x16xf32> -> vector<8x16xf32>
    %9 = vector.shape_cast %8 : vector<8x16xf32> to vector<1x8x16xf32>
    %c0_10 = arith.constant 0 : index
    %c0_11 = arith.constant 0 : index
    %c0_12 = arith.constant 0 : index
    %10 = vector.load %arg3[%c0_10, %c0_11, %c0_12] : memref<1x8x64xf32, #tpu.memory_space<vmem>>, vector<1x8x64xf32>
    %11 = vector.shape_cast %10 : vector<1x8x64xf32> to vector<8x64xf32>
    %c0_13 = arith.constant 0 : index
    %c0_14 = arith.constant 0 : index
    %12 = vector.load %arg7[%c0_13, %c0_14] : memref<64x16xf32, #tpu.memory_space<vmem>>, vector<64x16xf32>
    %cst_15 = arith.constant dense<0.000000e+00> : vector<8x16xf32>
    %13 = tpu.matmul %11, %12, %cst_15 {dimension_numbers = #tpu.dot_dimension_numbers<[1], [0], [0], [1], [0, 0, 1, 1], [], []>} : vector<8x64xf32>, vector<64x16xf32>, vector<8x16xf32> -> vector<8x16xf32>
    %14 = vector.shape_cast %13 : vector<8x16xf32> to vector<1x8x16xf32>
    %c0_16 = arith.constant 0 : index
    %c0_17 = arith.constant 0 : index
    %c0_18 = arith.constant 0 : index
    %15 = vector.load %arg4[%c0_16, %c0_17, %c0_18] : memref<1x8x16xf32, #tpu.memory_space<vmem>>, vector<1x8x16xf32>
    %cst_19 = arith.constant dense<0.000000e+00> : vector<1x8xf32>
    %16 = vector.multi_reduction <add>, %4, %cst_19 [2] : vector<1x8x16xf32> to vector<1x8xf32>
    %cst_20 = arith.constant 6.250000e-02 : f32
    %17 = vector.broadcast %cst_20 : f32 to vector<1x8xf32>
    %18 = arith.mulf %16, %17 : vector<1x8xf32>
    %c0_21 = arith.constant 0 : index
    %c0_22 = arith.constant 0 : index
    %19 = vector.load %arg8[%c0_21, %c0_22] : memref<32x2xf32, #tpu.memory_space<vmem>>, vector<8x2xf32>
    %cst_23 = arith.constant dense<0.000000e+00> : vector<1x2xf32>
    %20 = tpu.matmul %18, %19, %cst_23 {dimension_numbers = #tpu.dot_dimension_numbers<[1], [0], [0], [1], [0, 0, 1, 1], [], []>} : vector<1x8xf32>, vector<8x2xf32>, vector<1x2xf32> -> vector<1x2xf32>
    %cst_24 = arith.constant dense<0.000000e+00> : vector<1x8xf32>
    %21 = vector.multi_reduction <add>, %9, %cst_24 [2] : vector<1x8x16xf32> to vector<1x8xf32>
    %cst_25 = arith.constant 6.250000e-02 : f32
    %22 = vector.broadcast %cst_25 : f32 to vector<1x8xf32>
    %23 = arith.mulf %21, %22 : vector<1x8xf32>
    %c8 = arith.constant 8 : index
    %c0_26 = arith.constant 0 : index
    %24 = vector.load %arg8[%c8, %c0_26] : memref<32x2xf32, #tpu.memory_space<vmem>>, vector<8x2xf32>
    %cst_27 = arith.constant dense<0.000000e+00> : vector<1x2xf32>
    %25 = tpu.matmul %23, %24, %cst_27 {dimension_numbers = #tpu.dot_dimension_numbers<[1], [0], [0], [1], [0, 0, 1, 1], [], []>} : vector<1x8xf32>, vector<8x2xf32>, vector<1x2xf32> -> vector<1x2xf32>
    %26 = arith.addf %20, %25 : vector<1x2xf32>
    %cst_28 = arith.constant dense<0.000000e+00> : vector<1x8xf32>
    %27 = vector.multi_reduction <add>, %14, %cst_28 [2] : vector<1x8x16xf32> to vector<1x8xf32>
    %cst_29 = arith.constant 6.250000e-02 : f32
    %28 = vector.broadcast %cst_29 : f32 to vector<1x8xf32>
    %29 = arith.mulf %27, %28 : vector<1x8xf32>
    %c16 = arith.constant 16 : index
    %c0_30 = arith.constant 0 : index
    %30 = vector.load %arg8[%c16, %c0_30] : memref<32x2xf32, #tpu.memory_space<vmem>>, vector<8x2xf32>
    %cst_31 = arith.constant dense<0.000000e+00> : vector<1x2xf32>
    %31 = tpu.matmul %29, %30, %cst_31 {dimension_numbers = #tpu.dot_dimension_numbers<[1], [0], [0], [1], [0, 0, 1, 1], [], []>} : vector<1x8xf32>, vector<8x2xf32>, vector<1x2xf32> -> vector<1x2xf32>
    %32 = arith.addf %26, %31 : vector<1x2xf32>
    %cst_32 = arith.constant dense<0.000000e+00> : vector<1x8xf32>
    %33 = vector.multi_reduction <add>, %15, %cst_32 [2] : vector<1x8x16xf32> to vector<1x8xf32>
    %cst_33 = arith.constant 6.250000e-02 : f32
    %34 = vector.broadcast %cst_33 : f32 to vector<1x8xf32>
    %35 = arith.mulf %33, %34 : vector<1x8xf32>
    %c24 = arith.constant 24 : index
    %c0_34 = arith.constant 0 : index
    %36 = vector.load %arg8[%c24, %c0_34] : memref<32x2xf32, #tpu.memory_space<vmem>>, vector<8x2xf32>
    %cst_35 = arith.constant dense<0.000000e+00> : vector<1x2xf32>
    %37 = tpu.matmul %35, %36, %cst_35 {dimension_numbers = #tpu.dot_dimension_numbers<[1], [0], [0], [1], [0, 0, 1, 1], [], []>} : vector<1x8xf32>, vector<8x2xf32>, vector<1x2xf32> -> vector<1x2xf32>
    %38 = arith.addf %32, %37 : vector<1x2xf32>
    %cst_36 = arith.constant 0.000000e+00 : f32
    %39 = vector.broadcast %cst_36 : f32 to vector<1x2xf32>
    %40 = arith.maximumf %38, %39 : vector<1x2xf32>
    %c0_37 = arith.constant 0 : index
    %c0_38 = arith.constant 0 : index
    %41 = vector.load %arg9[%c0_37, %c0_38] : memref<2x32xf32, #tpu.memory_space<vmem>>, vector<2x32xf32>
    %cst_39 = arith.constant dense<0.000000e+00> : vector<1x32xf32>
    %42 = tpu.matmul %40, %41, %cst_39 {dimension_numbers = #tpu.dot_dimension_numbers<[1], [0], [0], [1], [0, 0, 1, 1], [], []>} : vector<1x2xf32>, vector<2x32xf32>, vector<1x32xf32> -> vector<1x32xf32>
    %43 = arith.negf %42 : vector<1x32xf32>
    %44 = math.exp %43 : vector<1x32xf32>
    %cst_40 = arith.constant 1.000000e+00 : f32
    %45 = vector.broadcast %cst_40 : f32 to vector<1x32xf32>
    %46 = arith.addf %45, %44 : vector<1x32xf32>
    %47 = arith.divf %45, %46 : vector<1x32xf32>
    %48 = vector.extract_strided_slice %47 {offsets = [0, 0], sizes = [1, 8], strides = [1, 1]} : vector<1x32xf32> to vector<1x8xf32>
    %49 = vector.shape_cast %48 : vector<1x8xf32> to vector<1x8x1xf32>
    %50 = vector.broadcast %49 : vector<1x8x1xf32> to vector<1x8x16xf32>
    %51 = arith.mulf %4, %50 : vector<1x8x16xf32>
    %c0_41 = arith.constant 0 : index
    %c0_42 = arith.constant 0 : index
    %c0_43 = arith.constant 0 : index
    %52 = vector.load %arg10[%c0_41, %c0_42, %c0_43] : memref<1x32x16xf32, #tpu.memory_space<vmem>>, vector<1x8x16xf32>
    tpu.vector_store %arg10[%c0_41, %c0_42, %c0_43], %51 {strides = array<i32>} : memref<1x32x16xf32, #tpu.memory_space<vmem>>, vector<1x8x16xf32>,
    %53 = vector.extract_strided_slice %47 {offsets = [0, 8], sizes = [1, 8], strides = [1, 1]} : vector<1x32xf32> to vector<1x8xf32>
    %54 = vector.shape_cast %53 : vector<1x8xf32> to vector<1x8x1xf32>
    %55 = vector.broadcast %54 : vector<1x8x1xf32> to vector<1x8x16xf32>
    %56 = arith.mulf %9, %55 : vector<1x8x16xf32>
    %c0_44 = arith.constant 0 : index
    %c8_45 = arith.constant 8 : index
    %c0_46 = arith.constant 0 : index
    %57 = vector.load %arg10[%c0_44, %c8_45, %c0_46] : memref<1x32x16xf32, #tpu.memory_space<vmem>>, vector<1x8x16xf32>
    tpu.vector_store %arg10[%c0_44, %c8_45, %c0_46], %56 {strides = array<i32>} : memref<1x32x16xf32, #tpu.memory_space<vmem>>, vector<1x8x16xf32>,
    %58 = vector.extract_strided_slice %47 {offsets = [0, 16], sizes = [1, 8], strides = [1, 1]} : vector<1x32xf32> to vector<1x8xf32>
    %59 = vector.shape_cast %58 : vector<1x8xf32> to vector<1x8x1xf32>
    %60 = vector.broadcast %59 : vector<1x8x1xf32> to vector<1x8x16xf32>
    %61 = arith.mulf %14, %60 : vector<1x8x16xf32>
    %c0_47 = arith.constant 0 : index
    %c16_48 = arith.constant 16 : index
    %c0_49 = arith.constant 0 : index
    %62 = vector.load %arg10[%c0_47, %c16_48, %c0_49] : memref<1x32x16xf32, #tpu.memory_space<vmem>>, vector<1x8x16xf32>
    tpu.vector_store %arg10[%c0_47, %c16_48, %c0_49], %61 {strides = array<i32>} : memref<1x32x16xf32, #tpu.memory_space<vmem>>, vector<1x8x16xf32>,
    %63 = vector.extract_strided_slice %47 {offsets = [0, 24], sizes = [1, 8], strides = [1, 1]} : vector<1x32xf32> to vector<1x8xf32>
    %64 = vector.shape_cast %63 : vector<1x8xf32> to vector<1x8x1xf32>
    %65 = vector.broadcast %64 : vector<1x8x1xf32> to vector<1x8x16xf32>
    %66 = arith.mulf %15, %65 : vector<1x8x16xf32>
    %c0_50 = arith.constant 0 : index
    %c24_51 = arith.constant 24 : index
    %c0_52 = arith.constant 0 : index
    %67 = vector.load %arg10[%c0_50, %c24_51, %c0_52] : memref<1x32x16xf32, #tpu.memory_space<vmem>>, vector<1x8x16xf32>
    tpu.vector_store %arg10[%c0_50, %c24_51, %c0_52], %66 {strides = array<i32>} : memref<1x32x16xf32, #tpu.memory_space<vmem>>, vector<1x8x16xf32>,
    return
  }
  func.func @transform_0(%arg0: i32) -> (i32, i32, i32) {
    %c0_i32 = arith.constant 0 : i32
    %c0_i32_0 = arith.constant 0 : i32
    %c0_i32_1 = arith.constant 0 : i32
    return %arg0, %c0_i32, %c0_i32_0 : i32, i32, i32
  }
  func.func @transform_1(%arg0: i32) -> (i32, i32, i32) {
    %c0_i32 = arith.constant 0 : i32
    %c0_i32_0 = arith.constant 0 : i32
    %c0_i32_1 = arith.constant 0 : i32
    return %arg0, %c0_i32, %c0_i32_0 : i32, i32, i32
  }
  func.func @transform_2(%arg0: i32) -> (i32, i32, i32) {
    %c0_i32 = arith.constant 0 : i32
    %c0_i32_0 = arith.constant 0 : i32
    %c0_i32_1 = arith.constant 0 : i32
    return %arg0, %c0_i32, %c0_i32_0 : i32, i32, i32
  }
  func.func @transform_3(%arg0: i32) -> (i32, i32, i32) {
    %c0_i32 = arith.constant 0 : i32
    %c0_i32_0 = arith.constant 0 : i32
    %c0_i32_1 = arith.constant 0 : i32
    return %arg0, %c0_i32, %c0_i32_0 : i32, i32, i32
  }
  func.func @transform_4(%arg0: i32) -> (i32, i32) {
    %c0_i32 = arith.constant 0 : i32
    %c0_i32_0 = arith.constant 0 : i32
    %c0_i32_1 = arith.constant 0 : i32
    return %c0_i32, %c0_i32_0 : i32, i32
  }
  func.func @transform_5(%arg0: i32) -> (i32, i32) {
    %c0_i32 = arith.constant 0 : i32
    %c0_i32_0 = arith.constant 0 : i32
    %c0_i32_1 = arith.constant 0 : i32
    return %c0_i32, %c0_i32_0 : i32, i32
  }
  func.func @transform_6(%arg0: i32) -> (i32, i32) {
    %c0_i32 = arith.constant 0 : i32
    %c0_i32_0 = arith.constant 0 : i32
    %c0_i32_1 = arith.constant 0 : i32
    return %c0_i32, %c0_i32_0 : i32, i32
  }
  func.func @transform_7(%arg0: i32) -> (i32, i32) {
    %c0_i32 = arith.constant 0 : i32
    %c0_i32_0 = arith.constant 0 : i32
    %c0_i32_1 = arith.constant 0 : i32
    return %c0_i32, %c0_i32_0 : i32, i32
  }
  func.func @transform_8(%arg0: i32) -> (i32, i32) {
    %c0_i32 = arith.constant 0 : i32
    %c0_i32_0 = arith.constant 0 : i32
    %c0_i32_1 = arith.constant 0 : i32
    return %c0_i32, %c0_i32_0 : i32, i32
  }
  func.func @transform_9(%arg0: i32) -> (i32, i32, i32) {
    %c0_i32 = arith.constant 0 : i32
    %c0_i32_0 = arith.constant 0 : i32
    %c0_i32_1 = arith.constant 0 : i32
    return %arg0, %c0_i32, %c0_i32_0 : i32, i32, i32
  }
}

</mosaic_0001>

<bundles_post_ra>
// kernel: tpu_custom_call.1
= control target key start
LH: loop header
LB: loop body
LE: loop exit
PB: predicated region body
PF: predicated region fallthrough
CT: control target
= control target key end

     0   :  { %s1187_s30 = smov 0   ;;  %s1786_s0 = inlined_call_operand.vmem [shape: f32[2,8,1024], index: 0, kind: input, shape index: {}]   ;;  %s1787_s1 = inlined_call_operand.vmem [shape: f32[2,8,256], index: 1, kind: input, shape index: {}]   ;;  %s1788_s2 = inlined_call_operand.vmem [shape: f32[2,8,64], index: 2, kind: input, shape index: {}]   ;;  %s1789_s3 = inlined_call_operand.vmem [shape: f32[2,8,16], index: 3, kind: input, shape index: {}]   ;;  %s1790_s4 = inlined_call_operand.vmem [shape: f32[1024,16], index: 4, kind: input, shape index: {}]   ;;  %s1791_s5 = inlined_call_operand.vmem [shape: f32[256,16], index: 5, kind: input, shape index: {}]   ;;  %s1792_s6 = inlined_call_operand.vmem [shape: f32[64,16], index: 6, kind: input, shape index: {}]   ;;  %s1793_s7 = inlined_call_operand.vmem [shape: f32[32,2], index: 7, kind: input, shape index: {}]   ;;  %s1794_s8 = inlined_call_operand.vmem [shape: f32[2,32], index: 8, kind: input, shape index: {}]   ;;  %s1795_s9 = inlined_call_operand.vmem [shape: f32[2,32,16], index: 9, kind: output, shape index: {}]  }
   0x1 LB: > { %s1086_s10 = sadd.s32 4294967295, %s1135_s30   ;;  %p1090_p0 = scmp.ge.s32.totalorder %s1135_s30, 1  ;;  %s1135_s30 = sphi %s1187_s30, %s19_s30  }
   0x2   : > { %p315_p1 = scmp.lt.s32.totalorder %s1135_s30, 3 }
   0x4   : > { %p316_p2 = pnand %p1090_p0, %p315_p1 }
   0x5   : > { %p1467_p3 = scmp.lt.s32.totalorder (!%p316_p2), %s1086_s10, 1 }
   0x6   : > { %319 = sbr.rel (%p316_p2) target bundleno = 791 (0x317), region = 56 }
   0xb   : > { %v410_v0 = vld [vmem:[%s1790_s4 + $0x78] sm:$0xff]  ;;  %v409_v2 = vld [vmem:[%s1790_s4 + $0x70] sm:$0xff]  ;;  %v408_v4 = vld [vmem:[%s1790_s4 + $0x68] sm:$0xff]  ;;  %s1798_s10 = smov (!%p1467_p3, %s1086_s10), 1  ;;  %vm766_vm0 = vcmask 523264   ;;  %vm791_vm1 = vcmask 130048  }
   0xc   : > { %v426_v1 = vld [vmem:[%s1790_s4 + $0xf8] sm:$0xff]  ;;  %523 = vmatpush.msra.mxu0 %v410_v0  ;;  %v425_v3 = vld [vmem:[%s1790_s4 + $0xf0] sm:$0xff]  ;;  %v424_v5 = vld [vmem:[%s1790_s4 + $0xe8] sm:$0xff]  ;;  %s1109_s15 = sshll.u32 %s1798_s10, 6  ;;  %s1095_s16 = sshll.u32 %s1798_s10, 3  ;;  %vm806_vm2 = vcmask 64512  }
   0xd   : > { %543 = vmatpush.msra.mxu1 %v426_v1  ;;  %v442_v6 = vld [vmem:[%s1790_s4 + $0x178] sm:$0xff]  ;;  %v441_v7 = vld [vmem:[%s1790_s4 + $0x170] sm:$0xff]  ;;  %v407_v9 = vld [vmem:[%s1790_s4 + $0x60] sm:$0xff]  ;;  %s1547_s11 = scalar_lea.vmem %s1786_s0, %s1109_s15  ;;  %s377_s27 = scalar_lea.vmem %s1788_s2, %s1095_s16  ;;  %vm919_vm3 = vcmask 1041408   ;;  %vm915_vm4 = vcmask 15360  }
   0xe   : > { %524 = vmatpush.msra.mxu0 %v409_v2  ;;  %v458_v8 = vld [vmem:[%s1790_s4 + $0x1f8] sm:$0xff]  ;;  %563 = vmatpush.msra.mxu2 %v442_v6  ;;  %v423_v10 = vld [vmem:[%s1790_s4 + $0xe0] sm:$0xff]  ;;  %v457_v11 = vld [vmem:[%s1790_s4 + $0x1f0] sm:$0xff]  ;;  %s1110_s20 = sshll.u32 %s1798_s10, 4  ;;  %s381_s26 = scalar_lea.vmem %s1789_s3, %s1095_s16 }
   0xf   : > { %544 = vmatpush.msra.mxu1 %v425_v3  ;;  %583 = vmatpush.msra.mxu3 %v458_v8  ;;  %v440_v12 = vld [vmem:[%s1790_s4 + $0x168] sm:$0xff]  ;;  %v406_v13 = vld [vmem:[%s1790_s4 + $0x58] sm:$0xff]  ;;  %v439_v16 = vld [vmem:[%s1790_s4 + $0x160] sm:$0xff]  ;;  %s1111_s17 = sshll.u32 %s1798_s10, 5 }
  0x10   : > { %525 = vmatpush.msra.mxu0 %v408_v4  ;;  %564 = vmatpush.msra.mxu2 %v441_v7  ;;  %v422_v14 = vld [vmem:[%s1790_s4 + $0xd8] sm:$0xff]  ;;  %v456_v15 = vld [vmem:[%s1790_s4 + $0x1e8] sm:$0xff]  ;;  %v455_v17 = vld [vmem:[%s1790_s4 + $0x1e0] sm:$0xff]  ;;  %s386_s19 = scalar_lea.vmem %s1795_s9, %s1111_s17 }
  0x11   : > { %545 = vmatpush.msra.mxu1 %v424_v5  ;;  %584 = vmatpush.msra.mxu3 %v457_v11  ;;  %v405_v18 = vld [vmem:[%s1790_s4 + $0x50] sm:$0xff]  ;;  %v438_v20 = vld [vmem:[%s1790_s4 + $0x158] sm:$0xff]  ;;  %v404_v22 = vld [vmem:[%s1790_s4 + $0x48] sm:$0xff] }
  0x12   : > { %526 = vmatpush.msra.mxu0 %v407_v9  ;;  %565 = vmatpush.msra.mxu2 %v440_v12  ;;  %v421_v19 = vld [vmem:[%s1790_s4 + $0xd0] sm:$0xff]  ;;  %v454_v21 = vld [vmem:[%s1790_s4 + $0x1d8] sm:$0xff]  ;;  %v420_v23 = vld [vmem:[%s1790_s4 + $0xc8] sm:$0xff] }
  0x13   : > { %546 = vmatpush.msra.mxu1 %v423_v10  ;;  %585 = vmatpush.msra.mxu3 %v456_v15  ;;  %v437_v24 = vld [vmem:[%s1790_s4 + $0x150] sm:$0xff]  ;;  %v403_v26 = vld [vmem:[%s1790_s4 + $0x40] sm:$0xff]  ;;  %v436_v28 = vld [vmem:[%s1790_s4 + $0x148] sm:$0xff] }
  0x14   : > { %527 = vmatpush.msra.mxu0 %v406_v13  ;;  %566 = vmatpush.msra.mxu2 %v439_v16  ;;  %v453_v25 = vld [vmem:[%s1790_s4 + $0x1d0] sm:$0xff]  ;;  %v419_v27 = vld [vmem:[%s1790_s4 + $0xc0] sm:$0xff]  ;;  %v452_v29 = vld [vmem:[%s1790_s4 + $0x1c8] sm:$0xff] }
  0x15   : > { %547 = vmatpush.msra.mxu1 %v422_v14  ;;  %586 = vmatpush.msra.mxu3 %v455_v17  ;;  %v402_v30 = vld [vmem:[%s1790_s4 + $0x38] sm:$0xff]  ;;  %v435_v32 = vld [vmem:[%s1790_s4 + $0x140] sm:$0xff]  ;;  %v401_v34 = vld [vmem:[%s1790_s4 + $0x30] sm:$0xff] }
  0x16   : > { %528 = vmatpush.msra.mxu0 %v405_v18  ;;  %567 = vmatpush.msra.mxu2 %v438_v20  ;;  %v418_v31 = vld [vmem:[%s1790_s4 + $0xb8] sm:$0xff]  ;;  %v451_v33 = vld [vmem:[%s1790_s4 + $0x1c0] sm:$0xff]  ;;  %v417_v35 = vld [vmem:[%s1790_s4 + $0xb0] sm:$0xff] }
  0x17   : > { %548 = vmatpush.msra.mxu1 %v421_v19  ;;  %587 = vmatpush.msra.mxu3 %v454_v21  ;;  %v434_v36 = vld [vmem:[%s1790_s4 + $0x138] sm:$0xff]  ;;  %v400_v38 = vld [vmem:[%s1790_s4 + $0x28] sm:$0xff]  ;;  %v433_v40 = vld [vmem:[%s1790_s4 + $0x130] sm:$0xff] }
  0x18   : > { %529 = vmatpush.msra.mxu0 %v404_v22  ;;  %568 = vmatpush.msra.mxu2 %v437_v24  ;;  %v450_v37 = vld [vmem:[%s1790_s4 + $0x1b8] sm:$0xff]  ;;  %v416_v39 = vld [vmem:[%s1790_s4 + $0xa8] sm:$0xff]  ;;  %v449_v41 = vld [vmem:[%s1790_s4 + $0x1b0] sm:$0xff] }
  0x19   : > { %549 = vmatpush.msra.mxu1 %v420_v23  ;;  %588 = vmatpush.msra.mxu3 %v453_v25  ;;  %v399_v42 = vld [vmem:[%s1790_s4 + $0x20] sm:$0xff]  ;;  %v432_v44 = vld [vmem:[%s1790_s4 + $0x128] sm:$0xff]  ;;  %v398_v46 = vld [vmem:[%s1790_s4 + $0x18] sm:$0xff] }
  0x1a   : > { %530 = vmatpush.msra.mxu0 %v403_v26  ;;  %569 = vmatpush.msra.mxu2 %v436_v28  ;;  %v415_v43 = vld [vmem:[%s1790_s4 + $0xa0] sm:$0xff]  ;;  %v448_v45 = vld [vmem:[%s1790_s4 + $0x1a8] sm:$0xff]  ;;  %v414_v47 = vld [vmem:[%s1790_s4 + $0x98] sm:$0xff] }
  0x1b   : > { %550 = vmatpush.msra.mxu1 %v419_v27  ;;  %589 = vmatpush.msra.mxu3 %v452_v29  ;;  %v431_v48 = vld [vmem:[%s1790_s4 + $0x120] sm:$0xff]  ;;  %v397_v50 = vld [vmem:[%s1790_s4 + $0x10] sm:$0xff]  ;;  %v430_v52 = vld [vmem:[%s1790_s4 + $0x118] sm:$0xff] }
  0x1c   : > { %531 = vmatpush.msra.mxu0 %v402_v30  ;;  %570 = vmatpush.msra.mxu2 %v435_v32  ;;  %v447_v49 = vld [vmem:[%s1790_s4 + $0x1a0] sm:$0xff]  ;;  %v413_v51 = vld [vmem:[%s1790_s4 + $0x90] sm:$0xff]  ;;  %v446_v53 = vld [vmem:[%s1790_s4 + $0x198] sm:$0xff] }
  0x1d   : > { %551 = vmatpush.msra.mxu1 %v418_v31  ;;  %590 = vmatpush.msra.mxu3 %v451_v33  ;;  %v396_v54 = vld [vmem:[%s1790_s4 + $0x8] sm:$0xff]  ;;  %v429_v56 = vld [vmem:[%s1790_s4 + $0x110] sm:$0xff]  ;;  %v395_v58 = vld [vmem:[%s1790_s4] sm:$0xff] }
  0x1e   : > { %532 = vmatpush.msra.mxu0 %v401_v34  ;;  %571 = vmatpush.msra.mxu2 %v434_v36  ;;  %v412_v55 = vld [vmem:[%s1790_s4 + $0x88] sm:$0xff]  ;;  %v445_v57 = vld [vmem:[%s1790_s4 + $0x190] sm:$0xff]  ;;  %v411_v59 = vld [vmem:[%s1790_s4 + $0x80] sm:$0xff] }
  0x1f   : > { %552 = vmatpush.msra.mxu1 %v417_v35  ;;  %591 = vmatpush.msra.mxu3 %v450_v37  ;;  %v474_v60 = vld [vmem:[%s1790_s4 + $0x278] sm:$0xff]  ;;  %v428_v62 = vld [vmem:[%s1790_s4 + $0x108] sm:$0xff]  ;;  %v473_v0 = vld [vmem:[%s1790_s4 + $0x270] sm:$0xff] }
  0x20   : > { %533 = vmatpush.msra.mxu0 %v400_v38  ;;  %572 = vmatpush.msra.mxu2 %v433_v40  ;;  %v490_v61 = vld [vmem:[%s1790_s4 + $0x2f8] sm:$0xff]  ;;  %v444_v63 = vld [vmem:[%s1790_s4 + $0x188] sm:$0xff]  ;;  %v489_v1 = vld [vmem:[%s1790_s4 + $0x2f0] sm:$0xff] }
  0x21   : > { %553 = vmatpush.msra.mxu1 %v416_v39  ;;  %592 = vmatpush.msra.mxu3 %v449_v41  ;;  %v427_v2 = vld [vmem:[%s1790_s4 + $0x100] sm:$0xff]  ;;  %v472_v4 = vld [vmem:[%s1790_s4 + $0x268] sm:$0xff]  ;;  %v506_v6 = vld [vmem:[%s1790_s4 + $0x378] sm:$0xff] }
  0x22   : > { %534 = vmatpush.msra.mxu0 %v399_v42  ;;  %573 = vmatpush.msra.mxu2 %v432_v44  ;;  %v443_v3 = vld [vmem:[%s1790_s4 + $0x180] sm:$0xff]  ;;  %v488_v5 = vld [vmem:[%s1790_s4 + $0x2e8] sm:$0xff]  ;;  %v522_v7 = vld [vmem:[%s1790_s4 + $0x3f8] sm:$0xff] }
  0x23   : > { %554 = vmatpush.msra.mxu1 %v415_v43  ;;  %593 = vmatpush.msra.mxu3 %v448_v45  ;;  %v471_v8 = vld [vmem:[%s1790_s4 + $0x260] sm:$0xff]  ;;  %v505_v10 = vld [vmem:[%s1790_s4 + $0x370] sm:$0xff]  ;;  %v470_v12 = vld [vmem:[%s1790_s4 + $0x258] sm:$0xff] }
  0x24   : > { %535 = vmatpush.msra.mxu0 %v398_v46  ;;  %574 = vmatpush.msra.mxu2 %v431_v48  ;;  %v487_v9 = vld [vmem:[%s1790_s4 + $0x2e0] sm:$0xff]  ;;  %v521_v11 = vld [vmem:[%s1790_s4 + $0x3f0] sm:$0xff]  ;;  %v486_v13 = vld [vmem:[%s1790_s4 + $0x2d8] sm:$0xff] }
  0x25   : > { %555 = vmatpush.msra.mxu1 %v414_v47  ;;  %594 = vmatpush.msra.mxu3 %v447_v49  ;;  %v504_v14 = vld [vmem:[%s1790_s4 + $0x368] sm:$0xff]  ;;  %v469_v16 = vld [vmem:[%s1790_s4 + $0x250] sm:$0xff]  ;;  %v503_v18 = vld [vmem:[%s1790_s4 + $0x360] sm:$0xff] }
  0x26   : > { %536 = vmatpush.msra.mxu0 %v397_v50  ;;  %575 = vmatpush.msra.mxu2 %v430_v52  ;;  %v520_v15 = vld [vmem:[%s1790_s4 + $0x3e8] sm:$0xff]  ;;  %v485_v17 = vld [vmem:[%s1790_s4 + $0x2d0] sm:$0xff]  ;;  %v519_v19 = vld [vmem:[%s1790_s4 + $0x3e0] sm:$0xff] }
  0x27   : > { %556 = vmatpush.msra.mxu1 %v413_v51  ;;  %595 = vmatpush.msra.mxu3 %v446_v53  ;;  %v468_v20 = vld [vmem:[%s1790_s4 + $0x248] sm:$0xff]  ;;  %v502_v22 = vld [vmem:[%s1790_s4 + $0x358] sm:$0xff]  ;;  %v467_v24 = vld [vmem:[%s1790_s4 + $0x240] sm:$0xff] }
  0x28   : > { %537 = vmatpush.msra.mxu0 %v396_v54  ;;  %576 = vmatpush.msra.mxu2 %v429_v56  ;;  %v484_v21 = vld [vmem:[%s1790_s4 + $0x2c8] sm:$0xff]  ;;  %v518_v23 = vld [vmem:[%s1790_s4 + $0x3d8] sm:$0xff]  ;;  %v483_v25 = vld [vmem:[%s1790_s4 + $0x2c0] sm:$0xff] }
  0x29   : > { %557 = vmatpush.msra.mxu1 %v412_v55  ;;  %596 = vmatpush.msra.mxu3 %v445_v57  ;;  %v501_v26 = vld [vmem:[%s1790_s4 + $0x350] sm:$0xff]  ;;  %v466_v28 = vld [vmem:[%s1790_s4 + $0x238] sm:$0xff]  ;;  %v500_v30 = vld [vmem:[%s1790_s4 + $0x348] sm:$0xff] }
  0x2a   : > { %538 = vmatpush.msra.mxu0 %v395_v58  ;;  %577 = vmatpush.msra.mxu2 %v428_v62  ;;  %v517_v27 = vld [vmem:[%s1790_s4 + $0x3d0] sm:$0xff]  ;;  %v482_v29 = vld [vmem:[%s1790_s4 + $0x2b8] sm:$0xff]  ;;  %v516_v31 = vld [vmem:[%s1790_s4 + $0x3c8] sm:$0xff] }
  0x2b   : > { %558 = vmatpush.msra.mxu1 %v411_v59  ;;  %597 = vmatpush.msra.mxu3 %v444_v63  ;;  %v465_v32 = vld [vmem:[%s1790_s4 + $0x230] sm:$0xff]  ;;  %v499_v34 = vld [vmem:[%s1790_s4 + $0x340] sm:$0xff]  ;;  %v464_v36 = vld [vmem:[%s1790_s4 + $0x228] sm:$0xff] }
  0x2c   : > { %603 = vmatpush.msrb.mxu0 %v474_v60  ;;  %578 = vmatpush.msra.mxu2 %v427_v2  ;;  %v481_v33 = vld [vmem:[%s1790_s4 + $0x2b0] sm:$0xff]  ;;  %v515_v35 = vld [vmem:[%s1790_s4 + $0x3c0] sm:$0xff]  ;;  %v480_v37 = vld [vmem:[%s1790_s4 + $0x2a8] sm:$0xff] }
  0x2d   : > { %623 = vmatpush.msrb.mxu1 %v490_v61  ;;  %598 = vmatpush.msra.mxu3 %v443_v3  ;;  %v498_v38 = vld [vmem:[%s1790_s4 + $0x338] sm:$0xff]  ;;  %v463_v40 = vld [vmem:[%s1790_s4 + $0x220] sm:$0xff]  ;;  %v497_v42 = vld [vmem:[%s1790_s4 + $0x330] sm:$0xff] }
  0x2e   : > { %604 = vmatpush.msrb.mxu0 %v473_v0  ;;  %643 = vmatpush.msrb.mxu2 %v506_v6  ;;  %v514_v39 = vld [vmem:[%s1790_s4 + $0x3b8] sm:$0xff]  ;;  %v479_v41 = vld [vmem:[%s1790_s4 + $0x2a0] sm:$0xff]  ;;  %v513_v43 = vld [vmem:[%s1790_s4 + $0x3b0] sm:$0xff] }
  0x2f   : > { %624 = vmatpush.msrb.mxu1 %v489_v1  ;;  %663 = vmatpush.msrb.mxu3 %v522_v7  ;;  %v462_v44 = vld [vmem:[%s1790_s4 + $0x218] sm:$0xff]  ;;  %v496_v46 = vld [vmem:[%s1790_s4 + $0x328] sm:$0xff]  ;;  %v461_v48 = vld [vmem:[%s1790_s4 + $0x210] sm:$0xff] }
  0x30   : > { %605 = vmatpush.msrb.mxu0 %v472_v4  ;;  %644 = vmatpush.msrb.mxu2 %v505_v10  ;;  %v478_v45 = vld [vmem:[%s1790_s4 + $0x298] sm:$0xff]  ;;  %v512_v47 = vld [vmem:[%s1790_s4 + $0x3a8] sm:$0xff]  ;;  %v477_v49 = vld [vmem:[%s1790_s4 + $0x290] sm:$0xff] }
  0x31   : > { %625 = vmatpush.msrb.mxu1 %v488_v5  ;;  %664 = vmatpush.msrb.mxu3 %v521_v11  ;;  %v495_v50 = vld [vmem:[%s1790_s4 + $0x320] sm:$0xff]  ;;  %v389_v52 = vld [vmem:[%s1547_s11 + $0x10] sm:$0xff]  ;;  %v460_v53 = vld [vmem:[%s1790_s4 + $0x208] sm:$0xff] }
  0x32   : > { %606 = vmatpush.msrb.mxu0 %v471_v8  ;;  %645 = vmatpush.msrb.mxu2 %v504_v14  ;;  %v511_v51 = vld [vmem:[%s1790_s4 + $0x3a0] sm:$0xff]  ;;  %v476_v54 = vld [vmem:[%s1790_s4 + $0x288] sm:$0xff]  ;;  %v494_v55 = vld [vmem:[%s1790_s4 + $0x318] sm:$0xff] }
  0x33   : > { %626 = vmatpush.msrb.mxu1 %v487_v9  ;;  %665 = vmatpush.msrb.mxu3 %v520_v15  ;;  %v387_v56 = vld [vmem:[%s1547_s11] sm:$0xff]  ;;  %v390_v57 = vld [vmem:[%s1547_s11 + $0x18] sm:$0xff]  ;;  %v493_v60 = vld [vmem:[%s1790_s4 + $0x310] sm:$0xff] }
  0x34   : > { %607 = vmatpush.msrb.mxu0 %v470_v12  ;;  %646 = vmatpush.msrb.mxu2 %v503_v18  ;;  %v459_v58 = vld [vmem:[%s1790_s4 + $0x200] sm:$0xff]  ;;  %v510_v61 = vld [vmem:[%s1790_s4 + $0x398] sm:$0xff]  ;;  %v388_v62 = vld [vmem:[%s1547_s11 + $0x8] sm:$0xff] }
  0x35   : > { %627 = vmatpush.msrb.mxu1 %v486_v13  ;;  %666 = vmatpush.msrb.mxu3 %v519_v19  ;;  %v475_v59 = vld [vmem:[%s1790_s4 + $0x280] sm:$0xff]  ;;  %v700_v63 = vld [vmem:[%s1791_s5 + $0x78] sm:$0xff]  ;;  %v492_v1 = vld [vmem:[%s1790_s4 + $0x308] sm:$0xff] }
  0x36   : > { %608 = vmatpush.msrb.mxu0 %v469_v16  ;;  %647 = vmatpush.msrb.mxu2 %v502_v22  ;;  %v716_v0 = vld [vmem:[%s1791_s5 + $0xf8] sm:$0xff]  ;;  %v509_v2 = vld [vmem:[%s1790_s4 + $0x390] sm:$0xff]  ;;  %v491_v5 = vld [vmem:[%s1790_s4 + $0x300] sm:$0xff] }
  0x37   : > { %628 = vmatpush.msrb.mxu1 %v485_v17  ;;  %667 = vmatpush.msrb.mxu3 %v518_v23  ;;  %v699_v3 = vld [vmem:[%s1791_s5 + $0x70] sm:$0xff]  ;;  %v508_v6 = vld [vmem:[%s1790_s4 + $0x388] sm:$0xff]  ;;  %v507_v10 = vld [vmem:[%s1790_s4 + $0x380] sm:$0xff] }
  0x38   : > { %609 = vmatpush.msrb.mxu0 %v468_v20  ;;  %648 = vmatpush.msrb.mxu2 %v501_v26  ;;  %v715_v4 = vld [vmem:[%s1791_s5 + $0xf0] sm:$0xff]  ;;  %v698_v8 = vld [vmem:[%s1791_s5 + $0x68] sm:$0xff]  ;;  %v391_v11 = vld [vmem:[%s1547_s11 + $0x20] sm:$0xff] }
  0x39   : > { %629 = vmatpush.msrb.mxu1 %v484_v21  ;;  %668 = vmatpush.msrb.mxu3 %v517_v27  ;;  %v393_v7 = vld [vmem:[%s1547_s11 + $0x30] sm:$0xff]  ;;  %v714_v9 = vld [vmem:[%s1791_s5 + $0xe8] sm:$0xff]  ;;  %v394_v12 = vld [vmem:[%s1547_s11 + $0x38] sm:$0xff] }
  0x3a   : > { %610 = vmatpush.msrb.mxu0 %v467_v24  ;;  %649 = vmatpush.msrb.mxu2 %v500_v30  ;;  %v697_v13 = vld [vmem:[%s1791_s5 + $0x60] sm:$0xff]  ;;  %v765_v15 = vld [vmem:[%s1792_s6 + $0x38] sm:$0xff]  ;;  %v392_v16 = vld [vmem:[%s1547_s11 + $0x28] sm:$0xff]  ;;  %s373_s11 = scalar_lea.vmem %s1787_s1, %s1110_s20 }
  0x3b   : > { %630 = vmatpush.msrb.mxu1 %v483_v25  ;;  %669 = vmatpush.msrb.mxu3 %v516_v31  ;;  %v713_v14 = vld [vmem:[%s1791_s5 + $0xe0] sm:$0xff]  ;;  %v696_v17 = vld [vmem:[%s1791_s5 + $0x58] sm:$0xff]  ;;  %v764_v19 = vld [vmem:[%s1792_s6 + $0x30] sm:$0xff] }
  0x3c   : > { %611 = vmatpush.msrb.mxu0 %v466_v28  ;;  %650 = vmatpush.msrb.mxu2 %v499_v34  ;;  %v712_v18 = vld [vmem:[%s1791_s5 + $0xd8] sm:$0xff]  ;;  %v695_v20 = vld [vmem:[%s1791_s5 + $0x50] sm:$0xff]  ;;  %v763_v22 = vld [vmem:[%s1792_s6 + $0x28] sm:$0xff] }
  0x3d   : > { %631 = vmatpush.msrb.mxu1 %v482_v29  ;;  %670 = vmatpush.msrb.mxu3 %v515_v35  ;;  %v711_v21 = vld [vmem:[%s1791_s5 + $0xd0] sm:$0xff]  ;;  %v694_v23 = vld [vmem:[%s1791_s5 + $0x48] sm:$0xff]  ;;  %v762_v25 = vld [vmem:[%s1792_s6 + $0x20] sm:$0xff] }
  0x3e   : > { %612 = vmatpush.msrb.mxu0 %v465_v32  ;;  %651 = vmatpush.msrb.mxu2 %v498_v38  ;;  %v710_v24 = vld [vmem:[%s1791_s5 + $0xc8] sm:$0xff]  ;;  %v693_v26 = vld [vmem:[%s1791_s5 + $0x40] sm:$0xff]  ;;  %v761_v28 = vld [vmem:[%s1792_s6 + $0x18] sm:$0xff] }
  0x3f   : > { %632 = vmatpush.msrb.mxu1 %v481_v33  ;;  %671 = vmatpush.msrb.mxu3 %v514_v39  ;;  %v709_v27 = vld [vmem:[%s1791_s5 + $0xc0] sm:$0xff]  ;;  %v692_v29 = vld [vmem:[%s1791_s5 + $0x38] sm:$0xff]  ;;  %v760_v31 = vld [vmem:[%s1792_s6 + $0x10] sm:$0xff] }
  0x40   : > { %613 = vmatpush.msrb.mxu0 %v464_v36  ;;  %652 = vmatpush.msrb.mxu2 %v497_v42  ;;  %v708_v30 = vld [vmem:[%s1791_s5 + $0xb8] sm:$0xff]  ;;  %v691_v32 = vld [vmem:[%s1791_s5 + $0x30] sm:$0xff]  ;;  %v759_v34 = vld [vmem:[%s1792_s6 + $0x8] sm:$0xff] }
  0x41   : > { %633 = vmatpush.msrb.mxu1 %v480_v37  ;;  %672 = vmatpush.msrb.mxu3 %v513_v43  ;;  %v707_v33 = vld [vmem:[%s1791_s5 + $0xb0] sm:$0xff]  ;;  %v690_v35 = vld [vmem:[%s1791_s5 + $0x28] sm:$0xff]  ;;  %v758_v37 = vld [vmem:[%s1792_s6] sm:$0xff] }
  0x42   : > { %614 = vmatpush.msrb.mxu0 %v463_v40  ;;  %653 = vmatpush.msrb.mxu2 %v496_v46  ;;  %v706_v36 = vld [vmem:[%s1791_s5 + $0xa8] sm:$0xff]  ;;  %v689_v38 = vld [vmem:[%s1791_s5 + $0x20] sm:$0xff]  ;;  %v704_v42 = vld [vmem:[%s1791_s5 + $0x98] sm:$0xff] }
  0x43   : > { %634 = vmatpush.msrb.mxu1 %v479_v41  ;;  %673 = vmatpush.msrb.mxu3 %v512_v47  ;;  %v757_v39 = vld [vmem:[%s377_s27] sm:$0xff]  ;;  %v688_v41 = vld [vmem:[%s1791_s5 + $0x18] sm:$0xff]  ;;  %v687_v43 = vld [vmem:[%s1791_s5 + $0x10] sm:$0xff] }
  0x44   : > { %615 = vmatpush.msrb.mxu0 %v462_v44  ;;  %654 = vmatpush.msrb.mxu2 %v495_v50  ;;  %v705_v40 = vld [vmem:[%s1791_s5 + $0xa0] sm:$0xff]  ;;  %v703_v44 = vld [vmem:[%s1791_s5 + $0x90] sm:$0xff]  ;;  %v702_v46 = vld [vmem:[%s1791_s5 + $0x88] sm:$0xff] }
  0x45   : > { %635 = vmatpush.msrb.mxu1 %v478_v45  ;;  %674 = vmatpush.msrb.mxu3 %v511_v51  ;;  %v686_v45 = vld [vmem:[%s1791_s5 + $0x8] sm:$0xff]  ;;  %v685_v47 = vld [vmem:[%s1791_s5] sm:$0xff] }
  0x46   : > { %616 = vmatpush.msrb.mxu0 %v461_v48  ;;  %579 = vmatmul.f32.vlgmr.msra.gmra.mxu2 %v389_v52  ;;  %v701_v48 = vld [vmem:[%s1791_s5 + $0x80] sm:$0xff]  ;;  %v684_v50 = vld [vmem:[%s373_s11 + $0x8] sm:$0xff] }
  0x47   : > { %636 = vmatpush.msrb.mxu1 %v477_v49  ;;  %655 = vmatpush.msrb.mxu2 %v494_v55  ;;  %v683_v49 = vld [vmem:[%s373_s11] sm:$0xff] }
  0x48   : > { %617 = vmatpush.msrb.mxu0 %v460_v53  ;;  %599 = vmatmul.f32.vlgmr.msra.gmra.mxu3 %v390_v57  ;;  %v801_v53 = vld [vmem:[%s1793_s7 + $0x8] sm:$0xff] }
  0x49   : > { %637 = vmatpush.msrb.mxu1 %v476_v54  ;;  %539 = vmatmul.f32.vlgmr.msra.gmra.mxu0 %v387_v56 }
  0x4a   : > { %618 = vmatpush.msrb.mxu0 %v459_v58  ;;  %656 = vmatpush.msrb.mxu2 %v493_v60 }
  0x4b   : > { %638 = vmatpush.msrb.mxu1 %v475_v59  ;;  %675 = vmatpush.msrb.mxu3 %v510_v61 }
  0x4c   : > { %559 = vmatmul.f32.vlgmr.msra.gmra.mxu1 %v388_v62  ;;  %717 = vmatpush.msra.mxu0 %v700_v63 }
  0x4d   : > { %737 = vmatpush.msra.mxu1 %v716_v0  ;;  %657 = vmatpush.msrb.mxu2 %v492_v1 }
  0x4e   : > { %676 = vmatpush.msrb.mxu3 %v509_v2  ;;  %718 = vmatpush.msra.mxu0 %v699_v3 }
  0x4f   : > { %738 = vmatpush.msra.mxu1 %v715_v4  ;;  %658 = vmatpush.msrb.mxu2 %v491_v5  ;;  %v1747_v4 = vld [vmem:[%s381_s26] sm:$0xff] }
  0x50   : > { %677 = vmatpush.msrb.mxu3 %v508_v6  ;;  %659 = vmatmul.f32.vlgmr.msrb.gmra.mxu2 %v393_v7 }
  0x51   : > { %719 = vmatpush.msra.mxu0 %v698_v8  ;;  %739 = vmatpush.msra.mxu1 %v714_v9  ;;  %v883_v8 = vsel %vm791_vm1, %v1747_v4, 0.0 }
  0x52   : > { %678 = vmatpush.msrb.mxu3 %v507_v10  ;;  %619 = vmatmul.f32.vlgmr.msrb.gmra.mxu0 %v391_v11 }
  0x53   : > { %679 = vmatmul.f32.vlgmr.msrb.gmra.mxu3 %v394_v12  ;;  %720 = vmatpush.msra.mxu0 %v697_v13  ;;  %v796_v12 = vld [vmem:[%s1793_s7] sm:$0xff]  ;;  %v857_v13 = vld [vmem:[%s1793_s7 + $0x10] sm:$0xff] }
  0x54   : > { %740 = vmatpush.msra.mxu1 %v713_v14  ;;  %778 = vmatpush.msra.mxu2 %v765_v15  ;;  %v803_v14 = vlaneseq }
  0x55   : > { %639 = vmatmul.f32.vlgmr.msrb.gmra.mxu1 %v392_v16  ;;  %721 = vmatpush.msra.mxu0 %v696_v17 }
  0x56   : > { %741 = vmatpush.msra.mxu1 %v712_v18  ;;  %779 = vmatpush.msra.mxu2 %v764_v19  ;;  %v804_v16 = vand.u32 127, %v803_v14 }
  0x57   : > { %722 = vmatpush.msra.mxu0 %v695_v20  ;;  %824 = vmatpush.msra.mxu3 %v801_v53 }
  0x58   : > { %742 = vmatpush.msra.mxu1 %v711_v21  ;;  %780 = vmatpush.msra.mxu2 %v763_v22  ;;  %v887_v22 = vld [vmem:[%s1793_s7 + $0x18] sm:$0xff] }
  0x59   : > { %723 = vmatpush.msra.mxu0 %v694_v23  ;;  %848 = vmatpush.msrb.mxu3 %v796_v12 }
  0x5a   : > { %743 = vmatpush.msra.mxu1 %v710_v24  ;;  %781 = vmatpush.msra.mxu2 %v762_v25 }
  0x5b   : > { %724 = vmatpush.msra.mxu0 %v693_v26 }
  0x5c   : > { %744 = vmatpush.msra.mxu1 %v709_v27  ;;  %782 = vmatpush.msra.mxu2 %v761_v28 }
  0x5d   : > { %725 = vmatpush.msra.mxu0 %v692_v29  ;;  %v914_v29 = vld [vmem:[%s1794_s8] sm:$0x3] }
  0x5e   : > { %745 = vmatpush.msra.mxu1 %v708_v30  ;;  %783 = vmatpush.msra.mxu2 %v760_v31 }
  0x5f   : > { %726 = vmatpush.msra.mxu0 %v691_v32 }
  0x60   : > { %746 = vmatpush.msra.mxu1 %v707_v33  ;;  %784 = vmatpush.msra.mxu2 %v759_v34 }
  0x61   : > { %727 = vmatpush.msra.mxu0 %v690_v35 }
  0x62   : > { %747 = vmatpush.msra.mxu1 %v706_v36  ;;  %785 = vmatpush.msra.mxu2 %v758_v37 }
  0x63   : > { %728 = vmatpush.msra.mxu0 %v689_v38  ;;  %1099 = vmatmul.msk.f32.vlgmr.msra.gmra.mxu2 %vm766_vm0, %v757_v39  ;;  %v964_v38 = vshrl.u32 %v803_v14, 7 }
  0x64   : > { %748 = vmatpush.msra.mxu1 %v705_v40  ;;  %877 = vmatpush.msrb.mxu2 %v857_v13 }
  0x65   : > { %729 = vmatpush.msra.mxu0 %v688_v41  ;;  %1120 = vset.pattern.permute.xlu2 %v964_v38  ;;  %v989_v39 = vadd.s32 24, %v964_v38  ;;  %v981_v40 = vadd.s32 16, %v964_v38 }
  0x66   : > { %749 = vmatpush.msra.mxu1 %v704_v42  ;;  %1104 = vmatpush.msk.msra.mxu2 %vm919_vm3, %v914_v29 }
  0x67   : > { %730 = vmatpush.msra.mxu0 %v687_v43  ;;  %1123 = vset.pattern.permute.xlu1 %v989_v39 }
  0x68   : > { %750 = vmatpush.msra.mxu1 %v703_v44  ;;  %1122 = vset.pattern.permute.xlu0 %v981_v40 }
  0x69   : > { %731 = vmatpush.msra.mxu0 %v686_v45 }
  0x6a   : > { %751 = vmatpush.msra.mxu1 %v702_v46 }
  0x6b   : > { %732 = vmatpush.msra.mxu0 %v685_v47 }
  0x6c   : > { %752 = vmatpush.msra.mxu1 %v701_v48  ;;  %733 = vmatmul.f32.vlgmr.msra.gmra.mxu0 %v683_v49 }
  0x6d   : > { %753 = vmatmul.f32.vlgmr.msra.gmra.mxu1 %v684_v50 }
  0xc6   : > { %v540_v54 = vpop.f32.mrf.mxu0 }
  0xc9   : > { %v580_v51 = vpop.f32.mrf.mxu2  ;;  %v560_v52 = vpop.f32.mrf.mxu1 }
  0xca   : > { %v561_v55 = vadd.f32 %v560_v52, %v540_v54 }
  0xcb   : > { %v600_v57 = vpop.f32.mrf.mxu3 }
  0xcc   : > { %v581_v56 = vadd.f32 %v580_v51, %v561_v55 }
  0xce   : > { %v601_v59 = vadd.f32 %v600_v57, %v581_v56  ;;  %v973_v56 = vadd.s32 8, %v964_v38 }
  0xcf   : > { %v620_v60 = vpop.f32.mrf.mxu0 }
  0xd0   : > { %v621_v62 = vadd.f32 %v620_v60, %v601_v59 }
  0xd2   : > { %v640_v61 = vpop.f32.mrf.mxu1 }
  0xd3   : > { %v660_v58 = vpop.f32.mrf.mxu2  ;;  %v641_v1 = vadd.f32 %v640_v61, %v621_v62 }
  0xd5   : > { %v661_v6 = vadd.f32 %v660_v58, %v641_v1 }
  0xd6   : > { %v680_v9 = vpop.f32.mrf.mxu3 }
  0xd7   : > { %v1755_v10 = vadd.f32 %v680_v9, %v661_v6 }
  0xd9   : > { %v792_v11 = vsel %vm791_vm1, %v1755_v10, 0.0 }
  0xe6   : > { %v1738_v63 = vpop.f32.mrf.mxu2 }
  0xe7   : > { %v853_v0 = vsel %vm791_vm1, %v1738_v63, 0.0 }
  0xe8   : > { %854 = vadd.xlane.f32.xlu1 %v853_v0 }
  0xe9   : > { %v734_v2 = vpop.f32.mrf.mxu0 }
  0xea   : > { %v754_v3 = vpop.f32.mrf.mxu1 }
  0xeb   : > { %v1749_v5 = vadd.f32 %v754_v3, %v734_v2 }
  0xed   : > { %v797_v7 = vsel %vm791_vm1, %v1749_v5, 0.0 }
  0xee   : > { %798 = vadd.xlane.f32.xlu0 %v797_v7 }
  0xf0   : > { %884 = vadd.xlane.f32.xlu1 %v883_v8 }
  0xf6   : > { %793 = vadd.xlane.f32.xlu0 %v792_v11 }
 0x15b   : > { %v855_v15 = vpop.xlane.xlu1 %854 }
 0x15c   : > { %v856_v17 = vmul.f32 0.0625, %v855_v15 }
 0x15e   : > { %v859_v18 = vperm.slane %v856_v17, %v804_v16 }
 0x160   : > { %1102 = vmatmul.msk.f32.vlgmr.msrb.gmra.mxu2 %vm806_vm2, %v859_v18 }
 0x161   : > { %v799_v19 = vpop.xlane.xlu0 %798 }
 0x162   : > { %v800_v20 = vmul.f32 0.0625, %v799_v19 }
 0x163   : > { %v885_v25 = vpop.xlane.xlu1 %884 }
 0x164   : > { %v805_v21 = vperm.slane %v800_v20, %v804_v16  ;;  %v886_v27 = vmul.f32 0.0625, %v885_v25 }
 0x166   : > { %1100 = vmatmul.msk.f32.vlgmr.msra.gmra.mxu3 %vm806_vm2, %v805_v21  ;;  %v889_v28 = vperm.slane %v886_v27, %v804_v16 }
 0x167   : > { %907 = vmatpush.msra.mxu3 %v887_v22 }
 0x169   : > { %v794_v23 = vpop.xlane.xlu0 %793 }
 0x16a   : > { %v795_v24 = vmul.f32 0.0625, %v794_v23 }
 0x16c   : > { %v830_v26 = vperm.slane %v795_v24, %v804_v16 }
 0x16e   : > { %1101 = vmatmul.msk.f32.vlgmr.msrb.gmra.mxu3 %vm806_vm2, %v830_v26 }
 0x176   : > { %1103 = vmatmul.msk.f32.vlgmr.msra.gmra.mxu3 %vm806_vm2, %v889_v28 }
 0x1e3   : > { %v879_v33 = vpop.f32.mrf.mxu2 }
 0x1e9   : > { %v826_v30 = vpop.f32.mrf.mxu3 }
 0x1f1   : > { %v850_v31 = vpop.f32.mrf.mxu3 }
 0x1f2   : > { %v851_v32 = vadd.f32 %v850_v31, %v826_v30 }
 0x1f4   : > { %v882_v34 = vadd.f32 %v879_v33, %v851_v32 }
 0x1f9   : > { %v909_v35 = vpop.f32.mrf.mxu3 }
 0x1fa   : > { %v912_v36 = vadd.f32 %v909_v35, %v882_v34 }
 0x1fc   : > { %v913_v37 = vmax.f32 %v912_v36, 0.0 }
 0x1fe   : > { %1105 = vmatmul.msk.f32.vlgmr.msra.gmra.mxu2 %vm915_vm4, %v913_v37 }
 0x281   : > { %v940_v41 = vpop.f32.mrf.mxu2 }
 0x282   : > { %v1106_v42 = vmul.f32 -1.442695, %v940_v41 }
 0x284   : > { %1125 = vpow2.f32 %v1106_v42 }
 0x28a   : > { %v1126_v43 = vpop.eup %1125 }
 0x28b   : > { %v946_v44 = vadd.f32 1.0, %v1126_v43 }
 0x28d   : > { %1127 = vrcp.f32 %v946_v44  ;;  %v958_v48 = vand.u32 2147483648, %v946_v44  ;;  %v956_v50 = vand.u32 2147483647, %v946_v44  ;;  %vm952_vm6 = vweird.f32 %v946_v44 }
 0x28f   : > { %v959_v52 = vor.u32 1.1754944e-38, %v958_v48  ;;  %vm957_vm8 = vcmp.eq.f32.partialorder %v956_v50, 8.507059e+37 }
 0x293   : > { %v1128_v45 = vpop.eup %1127 }
 0x294   : > { %v948_v46 = vmul.f32 %v1128_v45, %v946_v44  ;;  %vm953_vm5 = vweird.f32 %v1128_v45 }
 0x295   : > { %vm954_vm7 = vmor %vm952_vm6, %vm953_vm5 }
 0x296   : > { %v949_v47 = vsub.f32 1.0, %v948_v46 }
 0x298   : > { %v950_v49 = vmul.f32 %v1128_v45, %v949_v47 }
 0x29a   : > { %v951_v51 = vadd.f32 %v1128_v45, %v950_v49 }
 0x29c   : > { %v955_v53 = vsel %vm954_vm7, %v1128_v45, %v951_v51 }
 0x29d   : > { %v960_v54 = vsel %vm957_vm8, %v959_v52, %v955_v53 }
 0x29e   : > { %v962_v55 = vperm.slane %v960_v54, 0 }
 0x2a0   : > { %991 = vperm.xlu1 %1123, %v962_v55   ;;  %983 = vperm.xlu0 %1122, %v962_v55  }
 0x2a1   : > { %967 = vperm.xlu2 %1120, %v962_v55  }
 0x2a8   : > { %1124 = vset.pattern.permute.xlu0 %v989_v39 }
 0x2a9   : > { %1121 = vset.pattern.permute.xlu2 %v973_v56 }
 0x2b1   : > { %975 = vperm.xlu2 %1121, %v962_v55  }
 0x2fb   : > { %v968_v57 = vpop.permute.xlu2 %967 }
 0x2fc   : > { %v969_v58 = vmul.f32 %v968_v57, %v1755_v10 }
 0x2fe   : > { %970 = vst.msk [vmem:[%s386_s19] sm:$0xff] %vm791_vm1, %v969_v58 }
 0x30b   : > { %v976_v59 = vpop.permute.xlu2 %975 }
 0x30c   : > { %v977_v60 = vmul.f32 %v976_v59, %v1749_v5 }
 0x30e   : > { %978 = vst.msk [vmem:[%s386_s19 + $0x8] sm:$0xff] %vm791_vm1, %v977_v60 }
 0x312   : > { %v992_v61 = vpop.permute.xlu1 %991  ;;  %v984_v62 = vpop.permute.xlu0 %983 }
 0x313   : > { %v993_v0 = vmul.f32 %v992_v61, %v1747_v4  ;;  %v985_v1 = vmul.f32 %v984_v62, %v1738_v63 }
 0x315   : > { %994 = vst.msk [vmem:[%s386_s19 + $0x18] sm:$0xff] %vm791_vm1, %v993_v0 }
 0x316   : > { %986 = vst.msk [vmem:[%s386_s19 + $0x10] sm:$0xff] %vm791_vm1, %v985_v1 }
 0x317 PF: > { %s19_s30 = sadd.s32 1, %s1135_s30  }
 0x318   : > { %p16_p4 = scmp.ge.s32.totalorder %s19_s30, 4  }
 0x31a   :  { %18 = sbr.rel (!%p16_p4) target bundleno = 1 (0x1), region = 95 }

</bundles_post_ra>
